<compile_context>
chip_gen: v7x
topology: tpu7x:2x2x1
jax: 0.10.0
libtpu: 0.0.40
codegen_flags: <defaults>
</compile_context>

<pallas_src>
import jax
import jax.numpy as jnp
from jax.experimental import pallas as pl
from jax.experimental.pallas import tpu as pltpu


# --------------------------- tiled, pipelined copy ---------------------------

def _copy_kernel(r_ref, out_ref):
    # LRP-ReLU: relevance is propagated unchanged.
    out_ref[...] = r_ref[...]


# ---------------------- whole-array HBM -> HBM DMA copy ----------------------

def _dma_copy_kernel(r_hbm, out_hbm, sem):
    cp = pltpu.make_async_copy(r_hbm, out_hbm, sem)
    cp.start()
    cp.wait()


_LANE_CANDIDATES = (8192, 4096, 2048, 1024, 512, 256, 128)
_TARGET_BLOCK_BYTES = 8 * 1024 * 1024    # ~8 MiB per operand block
_VMEM_LIMIT_MIN = 16 * 1024 * 1024
_VMEM_LIMIT_MAX = 48 * 1024 * 1024       # < 64 MiB physical VMEM on v7x


def _sublane_multiple(dtype) -> int:
    # Native packed tile: (8,128) for 32-bit, (16,128) for 16-bit, (32,128) for 8-bit.
    itemsize = jnp.dtype(dtype).itemsize
    return max(8, 32 // max(1, itemsize))


def _pick_lane_dense_shape(total: int, sub: int):
    """(rows, cols) with cols a multiple of 128 and rows a multiple of `sub`."""
    for c in _LANE_CANDIDATES:
        if total % c == 0 and (total // c) % sub == 0:
            return total // c, c
    return None


def _pick_row_tile(rows: int, sub: int, max_tm: int) -> int:
    """Largest multiple of `sub` that divides `rows` and is <= max_tm."""
    max_tm = max(sub, min(max_tm, rows))
    t = (max_tm // sub) * sub
    while t >= sub:
        if rows % t == 0:
            return t
        t -= sub
    return sub  # unreachable: `sub` divides `rows` by construction


def _tiled_copy(r2: jax.Array, tm: int) -> jax.Array:
    rows, cols = r2.shape
    block_bytes = tm * cols * jnp.dtype(r2.dtype).itemsize
    # 2 double-buffered input blocks + 2 double-buffered output blocks + margin.
    vmem_limit = min(_VMEM_LIMIT_MAX,
                     max(_VMEM_LIMIT_MIN, 4 * block_bytes + 4 * 1024 * 1024))
    return pl.pallas_call(
        _copy_kernel,
        out_shape=jax.ShapeDtypeStruct((rows, cols), r2.dtype),
        grid_spec=pltpu.PrefetchScalarGridSpec(
            num_scalar_prefetch=0,
            grid=(pl.cdiv(rows, tm),),
            in_specs=[pl.BlockSpec((tm, cols), lambda i: (i, 0))],
            out_specs=pl.BlockSpec((tm, cols), lambda i: (i, 0)),
        ),
        compiler_params=pltpu.CompilerParams(
            dimension_semantics=("parallel",),
            vmem_limit_bytes=vmem_limit,
        ),
    )(r2)


def _dma_copy(r: jax.Array) -> jax.Array:
    # Pure HBM->HBM DMA: no VMEM staging, no (8,128) layout constraints.
    return pl.pallas_call(
        _dma_copy_kernel,
        out_shape=jax.ShapeDtypeStruct(r.shape, r.dtype),
        in_specs=[pl.BlockSpec(memory_space=pl.ANY)],
        out_specs=pl.BlockSpec(memory_space=pl.ANY),
        scratch_shapes=[pltpu.SemaphoreType.DMA],
    )(r)


def _relevance_propagation_relu(a: jax.Array, r: jax.Array) -> jax.Array:
    """Pallas equivalent of RelevancePropagationReLU.forward(a, r)."""
    assert a.shape == r.shape, "a and r must share a shape"
    del a  # LRP-ReLU ignores the activations; relevance passes through as-is.

    orig_shape = r.shape
    total = 1
    for d in orig_shape:
        total *= d

    itemsize = jnp.dtype(r.dtype).itemsize
    sub = _sublane_multiple(r.dtype)

    factored = _pick_lane_dense_shape(total, sub)
    if factored is None:
        # No lane-dense factorization -> whole-array DMA copy instead of a
        # masked / padded VMEM pipeline.
        return _dma_copy(r)

    rows, cols = factored
    target_tm = max(sub, _TARGET_BLOCK_BYTES // (cols * itemsize))
    total_bytes = total * itemsize
    if total_bytes > 2 * _TARGET_BLOCK_BYTES:
        # Keep grid >= 2 so both v7x TensorCores can stream independent halves.
        half = -(-rows // 2)
        half = max(sub, ((half + sub - 1) // sub) * sub)
        target_tm = min(target_tm, half)
    tm = _pick_row_tile(rows, sub, target_tm)

    out = _tiled_copy(r.reshape(rows, cols), tm)
    return out.reshape(orig_shape)


# Static shapes -> jit fuses the reshapes (bitcasts) around the custom call
# and keeps the Python tiling heuristic off the dispatch path.
relevance_propagation_relu = jax.jit(_relevance_propagation_relu)


if __name__ == "__main__":
    key = jax.random.PRNGKey(0)
    ka, kr, kr2 = jax.random.split(key, 3)

    # NCHW activations / relevance consistent with a conv-net ReLU layer.
    a = jnp.maximum(jax.random.normal(ka, (2, 4, 16, 16), dtype=jnp.float32), 0.0)
    r = jax.random.normal(kr, (2, 4, 16, 16), dtype=jnp.float32)

    out = jax.block_until_ready(relevance_propagation_relu(a, r))
    assert out.shape == r.shape and out.dtype == r.dtype
    assert bool(jnp.all(out == r))

    # Exercise the HBM->HBM DMA fallback (shape with no lane-dense factoring).
    a2 = jnp.zeros((3, 128), dtype=jnp.float32)
    r2 = jax.random.normal(kr2, (3, 128), dtype=jnp.float32)
    out2 = jax.block_until_ready(relevance_propagation_relu(a2, r2))
    assert out2.shape == r2.shape and out2.dtype == r2.dtype
    assert bool(jnp.all(out2 == r2))

    print("KERNEL_OK")
</pallas_src>

<mosaic_0001>
module attributes {stable_mosaic.version = 11 : i64} {
  func.func @_copy_kernel(%arg0: i32, %arg1: memref<8x256xf32, #tpu.memory_space<vmem>>, %arg2: memref<8x256xf32, #tpu.memory_space<vmem>>) attributes {dimension_semantics = [#tpu.dimension_semantics<parallel>], iteration_bounds = array<i64: 1>, scalar_prefetch = 0 : i64, scratch_operands = 0 : i64, tpu.core_type = #tpu.core_type<tc>, window_params = [{transform_indices = @transform_0, window_bounds = array<i64: 8, 256>}, {transform_indices = @transform_1, window_bounds = array<i64: 8, 256>}]} {
    %c0 = arith.constant 0 : index
    %c0_0 = arith.constant 0 : index
    %0 = vector.load %arg1[%c0, %c0_0] : memref<8x256xf32, #tpu.memory_space<vmem>>, vector<8x256xf32>
    %c0_1 = arith.constant 0 : index
    %c0_2 = arith.constant 0 : index
    %1 = vector.load %arg2[%c0_1, %c0_2] : memref<8x256xf32, #tpu.memory_space<vmem>>, vector<8x256xf32>
    tpu.vector_store %arg2[%c0_1, %c0_2], %0 {strides = array<i32>} : memref<8x256xf32, #tpu.memory_space<vmem>>, vector<8x256xf32>,
    return
  }
  func.func @transform_0(%arg0: i32) -> (i32, i32) {
    %c0_i32 = arith.constant 0 : i32
    %c0_i32_0 = arith.constant 0 : i32
    return %arg0, %c0_i32 : i32, i32
  }
  func.func @transform_1(%arg0: i32) -> (i32, i32) {
    %c0_i32 = arith.constant 0 : i32
    %c0_i32_0 = arith.constant 0 : i32
    return %arg0, %c0_i32 : i32, i32
  }
}

</mosaic_0001>

<bundles_post_ra>
// kernel: _relevance_propagation_relu.1
= control target key start
LH: loop header
LB: loop body
LE: loop exit
PB: predicated region body
PF: predicated region fallthrough
CT: control target
= control target key end

     0   :  { %s38_s0 = inlined_call_operand.vmem [shape: f32[8,256], index: 0, kind: input, shape index: {}]   ;;  %s39_s1 = inlined_call_operand.vmem [shape: f32[8,256], index: 1, kind: output, shape index: {}]  }
   0x1   :  { %v8_v0 = vld [vmem:[%s38_s0] sm:$0xff]  ;;  %v9_v1 = vld [vmem:[%s38_s0 + $0x8] sm:$0xff] }
   0x2   :  { %10 = vst [vmem:[%s39_s1] sm:$0xff] %v8_v0  ;;  %11 = vst [vmem:[%s39_s1 + $0x8] sm:$0xff] %v9_v1 }

</bundles_post_ra>
